<compile_context>
chip_gen: v5e
topology: v5e:2x2
jax: 0.10.0
libtpu: 0.0.40
codegen_flags: <defaults>
</compile_context>

<pallas_src>
import jax
import jax.numpy as jnp
from jax.experimental import pallas as pl
from jax.experimental.pallas import tpu as pltpu

LN_EPS = 1e-5  # torch.nn.LayerNorm default


# ----------------------------- kernel ----------------------------------------

def make_fused_mlp_kernel(n_hidden):
    """Build a fused-MLP kernel for `n_hidden` hidden (Linear->ReLU->LN) layers.

    Ref layout: (x, [w_i, v_i] * n_hidden, wf, bf, out)
      w_i : (in, H)   weight, already transposed vs. torch
      v_i : (3, H)    rows = (bias, gamma, beta)  -- packed small vectors
      wf  : (H, C), bf: (1, C)
    """

    def kernel(*refs):
        x_ref, o_ref = refs[0], refs[-1]
        y = x_ref[...]
        idx = 1
        for _ in range(n_hidden):
            w_ref, v_ref = refs[idx], refs[idx + 1]
            idx += 2
            y = jnp.dot(y, w_ref[...], preferred_element_type=jnp.float32)
            y = jnp.maximum(y + v_ref[0:1, :], 0.0)           # bias + ReLU
            # one-pass LayerNorm statistics (biased variance, torch default)
            h_inv = 1.0 / y.shape[-1]
            s1 = jnp.sum(y, axis=-1, keepdims=True)
            s2 = jnp.sum(y * y, axis=-1, keepdims=True)
            mean = s1 * h_inv
            var = jnp.maximum(s2 * h_inv - mean * mean, 0.0)
            y = (y - mean) * jax.lax.rsqrt(var + LN_EPS)
            y = y * v_ref[1:2, :] + v_ref[2:3, :]              # gamma, beta
            # TODO(synk): F.dropout is identity in eval mode; training-mode dropout not implemented.
        wf_ref, bf_ref = refs[idx], refs[idx + 1]
        o_ref[...] = (
            jnp.dot(y, wf_ref[...], preferred_element_type=jnp.float32)
            + bf_ref[...]
        )

    return kernel


# ----------------------------- wrapper ----------------------------------------

def _round_up(n, m):
    return ((n + m - 1) // m) * m


def _resident_spec(shape):
    """Full-extent block that stays VMEM-resident across the whole grid."""
    zeros = (0,) * len(shape)
    return pl.BlockSpec(shape, lambda i: zeros)


def mlp_forward(x, params, *, tile_n=1024):
    """params = ([(w, b, gamma, beta), ...hidden layers...], (wf, bf))."""
    hidden, (wf, bf) = params
    N, F = x.shape
    C = wf.shape[1]
    n_hidden = len(hidden)
    kernel = make_fused_mlp_kernel(n_hidden)

    # Pack per-layer (bias, gamma, beta) into one (3, H) operand each.
    flat = []
    for (w, b, g, be) in hidden:
        flat.append(w.astype(jnp.float32))
        flat.append(jnp.stack([b, g, be], axis=0).astype(jnp.float32))
    flat.append(wf.astype(jnp.float32))
    flat.append(bf.reshape(1, C).astype(jnp.float32))

    # normalizations[0] is Identity (InputNorm=False)
    x = x.astype(jnp.float32)

    tile = min(int(tile_n), _round_up(N, 8))
    n_pad = _round_up(N, tile)
    xp = jnp.pad(x, ((0, n_pad - N), (0, 0))) if n_pad != N else x
    num_tiles = n_pad // tile

    if num_tiles == 1:
        # Small case: no grid, everything is a whole-array VMEM-resident ref.
        out = pl.pallas_call(
            kernel,
            out_shape=jax.ShapeDtypeStruct((n_pad, C), jnp.float32),
        )(xp, *flat)
    else:
        # Large case: stream node tiles, keep weights resident, megacore-parallel.
        in_specs = [pl.BlockSpec((tile, F), lambda i: (i, 0))]
        in_specs += [_resident_spec(a.shape) for a in flat]
        out = pl.pallas_call(
            kernel,
            out_shape=jax.ShapeDtypeStruct((n_pad, C), jnp.float32),
            grid=(num_tiles,),
            in_specs=in_specs,
            out_specs=pl.BlockSpec((tile, C), lambda i: (i, 0)),
            compiler_params=pltpu.CompilerParams(
                dimension_semantics=("parallel",)
            ),
        )(xp, *flat)

    return out[:N] if n_pad != N else out


# ----------------------------- reference & init -------------------------------

def mlp_reference(x, params):
    hidden, (wf, bf) = params
    y = x
    for (w, b, g, be) in hidden:
        y = jnp.maximum(y @ w + b, 0.0)
        mean = jnp.mean(y, axis=-1, keepdims=True)
        var = jnp.mean((y - mean) ** 2, axis=-1, keepdims=True)
        y = (y - mean) / jnp.sqrt(var + LN_EPS) * g + be
    return y @ wf + bf


def init_linear_params(key, fan_in, fan_out):
    """Mimics torch.nn.Linear.reset_parameters(): U(-1/sqrt(fan_in), 1/sqrt(fan_in)).
    Weight stored as (fan_in, fan_out) (transposed vs. torch)."""
    kw, kb = jax.random.split(key)
    bound = 1.0 / jnp.sqrt(fan_in)
    w = jax.random.uniform(kw, (fan_in, fan_out), jnp.float32, -bound, bound)
    b = jax.random.uniform(kb, (fan_out,), jnp.float32, -bound, bound)
    return w, b


# ----------------------------- main --------------------------------------------

if __name__ == "__main__":
    num_features, nhid, num_classes, depth = 16, 32, 8, 3

    key = jax.random.PRNGKey(0)
    kx, kx2, k0, k1, k2 = jax.random.split(key, 5)

    # layer 0: in -> hidden (+ LayerNorm); layer 1: hidden -> hidden (+ LayerNorm)
    w0, b0 = init_linear_params(k0, num_features, nhid)
    g0, be0 = jnp.ones((nhid,), jnp.float32), jnp.zeros((nhid,), jnp.float32)
    w1, b1 = init_linear_params(k1, nhid, nhid)
    g1, be1 = jnp.ones((nhid,), jnp.float32), jnp.zeros((nhid,), jnp.float32)
    wf, bf = init_linear_params(k2, nhid, num_classes)
    params = ([(w0, b0, g0, be0), (w1, b1, g1, be1)], (wf, bf))

    # Small case: single fused un-gridded kernel call.
    x_small = jax.random.normal(kx, (16, num_features), jnp.float32)
    out_small = mlp_forward(x_small, params)
    jax.block_until_ready(out_small)
    assert out_small.shape == (16, num_classes) and out_small.dtype == jnp.float32
    ref_small = mlp_reference(x_small, params)
    assert jnp.allclose(out_small, ref_small, rtol=1e-3, atol=1e-3)

    # Larger case: exercises the tiled (grid over node axis) path.
    x_large = jax.random.normal(kx2, (2048, num_features), jnp.float32)
    out_large = mlp_forward(x_large, params, tile_n=512)
    jax.block_until_ready(out_large)
    assert out_large.shape == (2048, num_classes)
    ref_large = mlp_reference(x_large, params)
    assert jnp.allclose(out_large, ref_large, rtol=1e-3, atol=1e-3)

    print("KERNEL_OK")
</pallas_src>

<mosaic_0001>
module attributes {stable_mosaic.version = 11 : i64} {
  func.func @kernel(%arg0: memref<16x16xf32, #tpu.memory_space<vmem>>, %arg1: memref<16x32xf32, #tpu.memory_space<vmem>>, %arg2: memref<3x32xf32, #tpu.memory_space<vmem>>, %arg3: memref<32x32xf32, #tpu.memory_space<vmem>>, %arg4: memref<3x32xf32, #tpu.memory_space<vmem>>, %arg5: memref<32x8xf32, #tpu.memory_space<vmem>>, %arg6: memref<1x8xf32, #tpu.memory_space<vmem>>, %arg7: memref<16x8xf32, #tpu.memory_space<vmem>>) attributes {dimension_semantics = [], scalar_prefetch = 0 : i64, scratch_operands = 0 : i64, tpu.core_type = #tpu.core_type<tc>} {
    %c0 = arith.constant 0 : index
    %c0_0 = arith.constant 0 : index
    %0 = vector.load %arg0[%c0, %c0_0] : memref<16x16xf32, #tpu.memory_space<vmem>>, vector<16x16xf32>
    %c0_1 = arith.constant 0 : index
    %c0_2 = arith.constant 0 : index
    %1 = vector.load %arg1[%c0_1, %c0_2] : memref<16x32xf32, #tpu.memory_space<vmem>>, vector<16x32xf32>
    %cst = arith.constant dense<0.000000e+00> : vector<16x32xf32>
    %2 = tpu.matmul %0, %1, %cst {dimension_numbers = #tpu.dot_dimension_numbers<[1], [0], [0], [1], [0, 0, 1, 1], [], []>} : vector<16x16xf32>, vector<16x32xf32>, vector<16x32xf32> -> vector<16x32xf32>
    %c0_3 = arith.constant 0 : index
    %c0_4 = arith.constant 0 : index
    %3 = vector.load %arg2[%c0_3, %c0_4] : memref<3x32xf32, #tpu.memory_space<vmem>>, vector<1x32xf32>
    %4 = vector.broadcast %3 : vector<1x32xf32> to vector<16x32xf32>
    %5 = arith.addf %2, %4 : vector<16x32xf32>
    %cst_5 = arith.constant 0.000000e+00 : f32
    %6 = vector.broadcast %cst_5 : f32 to vector<16x32xf32>
    %7 = arith.maximumf %5, %6 : vector<16x32xf32>
    %cst_6 = arith.constant dense<0.000000e+00> : vector<16xf32>
    %8 = vector.multi_reduction <add>, %7, %cst_6 [1] : vector<16x32xf32> to vector<16xf32>
    %9 = vector.shape_cast %8 : vector<16xf32> to vector<16x1xf32>
    %10 = arith.mulf %7, %7 : vector<16x32xf32>
    %cst_7 = arith.constant dense<0.000000e+00> : vector<16xf32>
    %11 = vector.multi_reduction <add>, %10, %cst_7 [1] : vector<16x32xf32> to vector<16xf32>
    %12 = vector.shape_cast %11 : vector<16xf32> to vector<16x1xf32>
    %cst_8 = arith.constant 3.125000e-02 : f32
    %13 = vector.broadcast %cst_8 : f32 to vector<16x1xf32>
    %14 = arith.mulf %9, %13 : vector<16x1xf32>
    %cst_9 = arith.constant 3.125000e-02 : f32
    %15 = vector.broadcast %cst_9 : f32 to vector<16x1xf32>
    %16 = arith.mulf %12, %15 : vector<16x1xf32>
    %17 = arith.mulf %14, %14 : vector<16x1xf32>
    %18 = arith.subf %16, %17 : vector<16x1xf32>
    %cst_10 = arith.constant 0.000000e+00 : f32
    %19 = vector.broadcast %cst_10 : f32 to vector<16x1xf32>
    %20 = arith.maximumf %18, %19 : vector<16x1xf32>
    %21 = vector.broadcast %14 : vector<16x1xf32> to vector<16x32xf32>
    %22 = arith.subf %7, %21 : vector<16x32xf32>
    %cst_11 = arith.constant 9.99999974E-6 : f32
    %23 = vector.broadcast %cst_11 : f32 to vector<16x1xf32>
    %24 = arith.addf %20, %23 : vector<16x1xf32>
    %25 = math.rsqrt %24 : vector<16x1xf32>
    %26 = vector.broadcast %25 : vector<16x1xf32> to vector<16x32xf32>
    %27 = arith.mulf %22, %26 : vector<16x32xf32>
    %c1 = arith.constant 1 : index
    %c0_12 = arith.constant 0 : index
    %28 = vector.load %arg2[%c1, %c0_12] : memref<3x32xf32, #tpu.memory_space<vmem>>, vector<1x32xf32>
    %29 = vector.broadcast %28 : vector<1x32xf32> to vector<16x32xf32>
    %30 = arith.mulf %27, %29 : vector<16x32xf32>
    %c2 = arith.constant 2 : index
    %c0_13 = arith.constant 0 : index
    %31 = vector.load %arg2[%c2, %c0_13] : memref<3x32xf32, #tpu.memory_space<vmem>>, vector<1x32xf32>
    %32 = vector.broadcast %31 : vector<1x32xf32> to vector<16x32xf32>
    %33 = arith.addf %30, %32 : vector<16x32xf32>
    %c0_14 = arith.constant 0 : index
    %c0_15 = arith.constant 0 : index
    %34 = vector.load %arg3[%c0_14, %c0_15] : memref<32x32xf32, #tpu.memory_space<vmem>>, vector<32x32xf32>
    %cst_16 = arith.constant dense<0.000000e+00> : vector<16x32xf32>
    %35 = tpu.matmul %33, %34, %cst_16 {dimension_numbers = #tpu.dot_dimension_numbers<[1], [0], [0], [1], [0, 0, 1, 1], [], []>} : vector<16x32xf32>, vector<32x32xf32>, vector<16x32xf32> -> vector<16x32xf32>
    %c0_17 = arith.constant 0 : index
    %c0_18 = arith.constant 0 : index
    %36 = vector.load %arg4[%c0_17, %c0_18] : memref<3x32xf32, #tpu.memory_space<vmem>>, vector<1x32xf32>
    %37 = vector.broadcast %36 : vector<1x32xf32> to vector<16x32xf32>
    %38 = arith.addf %35, %37 : vector<16x32xf32>
    %cst_19 = arith.constant 0.000000e+00 : f32
    %39 = vector.broadcast %cst_19 : f32 to vector<16x32xf32>
    %40 = arith.maximumf %38, %39 : vector<16x32xf32>
    %cst_20 = arith.constant dense<0.000000e+00> : vector<16xf32>
    %41 = vector.multi_reduction <add>, %40, %cst_20 [1] : vector<16x32xf32> to vector<16xf32>
    %42 = vector.shape_cast %41 : vector<16xf32> to vector<16x1xf32>
    %43 = arith.mulf %40, %40 : vector<16x32xf32>
    %cst_21 = arith.constant dense<0.000000e+00> : vector<16xf32>
    %44 = vector.multi_reduction <add>, %43, %cst_21 [1] : vector<16x32xf32> to vector<16xf32>
    %45 = vector.shape_cast %44 : vector<16xf32> to vector<16x1xf32>
    %cst_22 = arith.constant 3.125000e-02 : f32
    %46 = vector.broadcast %cst_22 : f32 to vector<16x1xf32>
    %47 = arith.mulf %42, %46 : vector<16x1xf32>
    %cst_23 = arith.constant 3.125000e-02 : f32
    %48 = vector.broadcast %cst_23 : f32 to vector<16x1xf32>
    %49 = arith.mulf %45, %48 : vector<16x1xf32>
    %50 = arith.mulf %47, %47 : vector<16x1xf32>
    %51 = arith.subf %49, %50 : vector<16x1xf32>
    %cst_24 = arith.constant 0.000000e+00 : f32
    %52 = vector.broadcast %cst_24 : f32 to vector<16x1xf32>
    %53 = arith.maximumf %51, %52 : vector<16x1xf32>
    %54 = vector.broadcast %47 : vector<16x1xf32> to vector<16x32xf32>
    %55 = arith.subf %40, %54 : vector<16x32xf32>
    %cst_25 = arith.constant 9.99999974E-6 : f32
    %56 = vector.broadcast %cst_25 : f32 to vector<16x1xf32>
    %57 = arith.addf %53, %56 : vector<16x1xf32>
    %58 = math.rsqrt %57 : vector<16x1xf32>
    %59 = vector.broadcast %58 : vector<16x1xf32> to vector<16x32xf32>
    %60 = arith.mulf %55, %59 : vector<16x32xf32>
    %c1_26 = arith.constant 1 : index
    %c0_27 = arith.constant 0 : index
    %61 = vector.load %arg4[%c1_26, %c0_27] : memref<3x32xf32, #tpu.memory_space<vmem>>, vector<1x32xf32>
    %62 = vector.broadcast %61 : vector<1x32xf32> to vector<16x32xf32>
    %63 = arith.mulf %60, %62 : vector<16x32xf32>
    %c2_28 = arith.constant 2 : index
    %c0_29 = arith.constant 0 : index
    %64 = vector.load %arg4[%c2_28, %c0_29] : memref<3x32xf32, #tpu.memory_space<vmem>>, vector<1x32xf32>
    %65 = vector.broadcast %64 : vector<1x32xf32> to vector<16x32xf32>
    %66 = arith.addf %63, %65 : vector<16x32xf32>
    %c0_30 = arith.constant 0 : index
    %c0_31 = arith.constant 0 : index
    %67 = vector.load %arg5[%c0_30, %c0_31] : memref<32x8xf32, #tpu.memory_space<vmem>>, vector<32x8xf32>
    %cst_32 = arith.constant dense<0.000000e+00> : vector<16x8xf32>
    %68 = tpu.matmul %66, %67, %cst_32 {dimension_numbers = #tpu.dot_dimension_numbers<[1], [0], [0], [1], [0, 0, 1, 1], [], []>} : vector<16x32xf32>, vector<32x8xf32>, vector<16x8xf32> -> vector<16x8xf32>
    %c0_33 = arith.constant 0 : index
    %c0_34 = arith.constant 0 : index
    %69 = vector.load %arg6[%c0_33, %c0_34] : memref<1x8xf32, #tpu.memory_space<vmem>>, vector<1x8xf32>
    %70 = vector.broadcast %69 : vector<1x8xf32> to vector<16x8xf32>
    %71 = arith.addf %68, %70 : vector<16x8xf32>
    %c0_35 = arith.constant 0 : index
    %c0_36 = arith.constant 0 : index
    %72 = vector.load %arg7[%c0_35, %c0_36] : memref<16x8xf32, #tpu.memory_space<vmem>>, vector<16x8xf32>
    tpu.vector_store %arg7[%c0_35, %c0_36], %71 {strides = array<i32>} : memref<16x8xf32, #tpu.memory_space<vmem>>, vector<16x8xf32>,
    return
  }
}

</mosaic_0001>

<bundles_post_ra>
// kernel: tpu_custom_call.1
= control target key start
LH: loop header
LB: loop body
LE: loop exit
PB: predicated region body
PF: predicated region fallthrough
CT: control target
= control target key end

     0   :  { %12 = vsyncpa [#allocation3], 0  ;;  %s496_s0 = inlined_call_operand.hbm [shape: f32[16,16], index: 0, kind: input, shape index: {}]   ;;  %s497_s1 = inlined_call_operand.hbm [shape: f32[16,32], index: 1, kind: input, shape index: {}]   ;;  %s498_s2 = inlined_call_operand.vmem [shape: f32[3,32], index: 2, kind: input, shape index: {}]   ;;  %s499_s3 = inlined_call_operand.vmem [shape: f32[32,32], index: 3, kind: input, shape index: {}]   ;;  %s500_s4 = inlined_call_operand.vmem [shape: f32[3,32], index: 4, kind: input, shape index: {}]   ;;  %s501_s5 = inlined_call_operand.vmem [shape: f32[32,8], index: 5, kind: input, shape index: {}]   ;;  %s502_s6 = inlined_call_operand.vmem [shape: f32[1,8], index: 6, kind: input, shape index: {}]   ;;  %s503_s7 = inlined_call_operand.vmem [shape: f32[16,8], index: 7, kind: output, shape index: {}]  }
   0x1   :  { %s18_s26 = sshll.u32 %s496_s0, 4  ;;  %s19_s26 = int_to_ptr.hbm [resolvable:$true] %s18_s26 }
   0x2   :  { %13 = vsyncpa [#allocation5], 0  ;;  %s377_s27 = smov [#allocation2]   ;;  %s31_s8 = sshll.u32 %s497_s1, 4  ;;  %s32_s8 = int_to_ptr.hbm [resolvable:$true] %s31_s8 }
   0x3   :  { %s20_s28 = sshll.u32 %s377_s27, 4  ;;  %s378_s9 = smov 128   ;;  %s21_s28 = int_to_ptr.vmem [resolvable:$true] %s20_s28 }
   0x4   :  { %s379_s10 = smov 8   ;;  %s380_s11 = smov [#allocation4]  }
   0x5   :  { %26 = dma.hbm_to_vmem [thread:$0]  %s19_s26, 256, %s21_s28, [#allocation3], %s378_s9, %s378_s9, %s379_s10  }
   0x6   :  { %s33_s12 = sshll.u32 %s380_s11, 4  ;;  %s34_s12 = int_to_ptr.vmem [resolvable:$true] %s33_s12 }
   0x7   :  { %39 = dma.hbm_to_vmem [thread:$0]  %s32_s8, 256, %s34_s12, [#allocation5], %s378_s9, %s378_s9, %s379_s10  }
   0x8   :  { %373 = dma.done.wait [#allocation3], 256  }
   0x9   :  { %374 = vsyncadd [#allocation3], 4294967040 }
   0xa   :  { %375 = dma.done.wait [#allocation5], 256  }
   0xb   :  { %376 = vsyncadd [#allocation5], 4294967040  ;;  %v61_v0 = vld [vmem:[#allocation4 + $0x8] sm:$0xff]  ;;  %v60_v1 = vld [vmem:[#allocation4] sm:$0xff]  ;;  %vm64_vm0 = vcmask 130048   ;;  %vm96_vm1 = vcmask 261120  }
   0xc   :  { %85 = vmatpush.msra.mxu0 %v61_v0  ;;  %v58_v2 = vld [vmem:[#allocation2] sm:$0xff]  ;;  %v59_v3 = vld [vmem:[#allocation2 + $0x8] sm:$0xff]  ;;  %v158_v17 = vld [vmem:[%s499_s3 + $0x18] sm:$0xff]  ;;  %vm287_vm14 = vcmask 64512  }
   0xd   :  { %v310_v4 = vld [vmem:[%s498_s2] ss:$0 sm:$0xff]  ;;  %179 = vmatpush.msra.mxu1 %v158_v17  ;;  %302 = vmatpush.msra.mxu3 %v158_v17  ;;  %v157_v18 = vld [vmem:[%s499_s3 + $0x10] sm:$0xff]  ;;  %v156_v20 = vld [vmem:[%s499_s3 + $0x8] sm:$0xff] }
   0xe   :  { %86 = vmatpush.msra.mxu0 %v60_v1  ;;  %v155_v23 = vld [vmem:[%s499_s3] sm:$0xff] }
   0xf   :  { %296 = vmatmul.msk.f32.vlgmr.msra.gmra.mxu0 %vm64_vm0, %v58_v2  ;;  %180 = vmatpush.msra.mxu1 %v157_v18  ;;  %v311_v46 = vld [vmem:[%s498_s2 + $0x1] ss:$0 sm:$0xff]  ;;  %v312_v50 = vld [vmem:[%s498_s2 + $0x2] ss:$0 sm:$0xff]  ;;  %v313_v61 = vld [vmem:[%s500_s4] ss:$0 sm:$0xff] }
  0x10   :  { %303 = vmatpush.msra.mxu3 %v157_v18 }
  0x11   :  { %181 = vmatpush.msra.mxu1 %v156_v20 }
  0x12   :  { %304 = vmatpush.msra.mxu3 %v156_v20 }
  0x13   :  { %182 = vmatpush.msra.mxu1 %v155_v23 }
  0x14   :  { %305 = vmatpush.msra.mxu3 %v155_v23 }
  0x17   :  { %297 = vmatmul.msk.f32.gmra.mxu0 %vm64_vm0, %v59_v3 }
  0x8c   :  { %v88_v5 = vpop.f32.mrf.mxu0 }
  0x8d   :  { %v89_v6 = vadd.f32 %v310_v4, %v88_v5 }
  0x8f   :  { %v94_v7 = vmax.f32 %v89_v6, 0.0 }
  0x91   :  { %v97_v8 = vsel %vm96_vm1, %v94_v7, 0.0  ;;  %v103_v9 = vmul.f32 %v94_v7, %v94_v7 }
  0x92   :  { %98 = vadd.xlane.f32.xlu0 %v97_v8 }
  0x93   :  { %v105_v10 = vsel %vm96_vm1, %v103_v9, 0.0 }
  0x94   :  { %v91_v11 = vpop.f32.mrf.mxu0  ;;  %106 = vadd.xlane.f32.xlu1 %v105_v10 }
  0x95   :  { %v92_v12 = vadd.f32 %v310_v4, %v91_v11  ;;  %v253_v11 = vld [vmem:[%s501_s5 + $0x18] sm:$0xff] }
  0x96   :  { %276 = vmatpush.msra.mxu2 %v253_v11 }
  0x97   :  { %v432_v13 = vmax.f32 %v92_v12, 0.0  ;;  %v252_v12 = vld [vmem:[%s501_s5 + $0x10] sm:$0xff] }
  0x98   :  { %277 = vmatpush.msra.mxu2 %v252_v12 }
  0x99   :  { %v100_v14 = vsel %vm96_vm1, %v432_v13, 0.0  ;;  %v104_v15 = vmul.f32 %v432_v13, %v432_v13 }
  0x9a   :  { %101 = vadd.xlane.f32.xlu0 %v100_v14  ;;  %v251_v14 = vld [vmem:[%s501_s5 + $0x8] sm:$0xff] }
  0x9b   :  { %v108_v16 = vsel %vm96_vm1, %v104_v15, 0.0  ;;  %278 = vmatpush.msra.mxu2 %v251_v14 }
  0x9c   :  { %109 = vadd.xlane.f32.xlu1 %v108_v16  ;;  %v250_v16 = vld [vmem:[%s501_s5] sm:$0xff] }
  0x9d   :  { %279 = vmatpush.msra.mxu2 %v250_v16 }
 0x105   :  { %v99_v19 = vpop.xlane.xlu0 %98 }
 0x106   :  { %v111_v21 = vmul.f32 0.03125, %v99_v19 }
 0x107   :  { %v107_v22 = vpop.xlane.xlu1 %106 }
 0x108   :  { %v115_v24 = vmul.f32 %v111_v21, %v111_v21  ;;  %v113_v25 = vmul.f32 0.03125, %v107_v22  ;;  %v121_v44 = vsub.f32 %v94_v7, %v111_v21 }
 0x10a   :  { %v117_v26 = vsub.f32 %v113_v25, %v115_v24 }
 0x10c   :  { %v119_v27 = vmax.f32 %v117_v26, 0.0 }
 0x10d   :  { %v102_v28 = vpop.xlane.xlu0 %101 }
 0x10e   :  { %v123_v29 = vadd.f32 1e-05, %v119_v27  ;;  %v112_v30 = vmul.f32 0.03125, %v102_v28 }
 0x10f   :  { %v110_v31 = vpop.xlane.xlu1 %109 }
 0x110   :  { %317 = vrsqrt.f32 %v123_v29  ;;  %v116_v32 = vmul.f32 %v112_v30, %v112_v30  ;;  %v114_v33 = vmul.f32 0.03125, %v110_v31  ;;  %vm131_vm3 = vweird.f32 %v123_v29 }
 0x111   :  { %v122_v56 = vsub.f32 %v432_v13, %v112_v30 }
 0x112   :  { %v118_v34 = vsub.f32 %v114_v33, %v116_v32 }
 0x114   :  { %v120_v35 = vmax.f32 %v118_v34, 0.0 }
 0x116   :  { %v318_v36 = vpop.eup %317  ;;  %v124_v38 = vadd.f32 1e-05, %v120_v35 }
 0x117   :  { %v126_v37 = vmul.f32 %v318_v36, %v123_v29  ;;  %vm132_vm2 = vweird.f32 %v318_v36 }
 0x118   :  { %319 = vrsqrt.f32 %v124_v38  ;;  %vm133_vm4 = vmor %vm131_vm3, %vm132_vm2  ;;  %vm141_vm6 = vweird.f32 %v124_v38 }
 0x119   :  { %v127_v39 = vmul.f32 %v318_v36, %v126_v37 }
 0x11b   :  { %v128_v40 = vmul.f32 0.5, %v127_v39  ;;  %v314_v39 = vld [vmem:[%s500_s4 + $0x1] ss:$0 sm:$0xff] }
 0x11d   :  { %v129_v41 = vsub.f32 1.5, %v128_v40 }
 0x11e   :  { %v320_v42 = vpop.eup %319 }
 0x11f   :  { %v130_v43 = vmul.f32 %v318_v36, %v129_v41  ;;  %v136_v45 = vmul.f32 %v320_v42, %v124_v38  ;;  %vm142_vm5 = vweird.f32 %v320_v42 }
 0x120   :  { %vm143_vm7 = vmor %vm141_vm6, %vm142_vm5 }
 0x121   :  { %v134_v47 = vsel %vm133_vm4, %v318_v36, %v130_v43  ;;  %v137_v48 = vmul.f32 %v320_v42, %v136_v45  ;;  %v315_v43 = vld [vmem:[%s500_s4 + $0x2] ss:$0 sm:$0xff] }
 0x122   :  { %v145_v49 = vmul.f32 %v134_v47, %v121_v44 }
 0x123   :  { %v138_v51 = vmul.f32 0.5, %v137_v48 }
 0x124   :  { %v149_v52 = vmul.f32 %v311_v46, %v145_v49 }
 0x125   :  { %v139_v53 = vsub.f32 1.5, %v138_v51 }
 0x126   :  { %v153_v54 = vadd.f32 %v312_v50, %v149_v52 }
 0x127   :  { %v140_v55 = vmul.f32 %v320_v42, %v139_v53 }
 0x128   :  { %298 = vmatmul.msk.f32.vlgmr.msra.gmra.mxu1 %vm96_vm1, %v153_v54  ;;  %v316_v54 = vld [vmem:[%s502_s6] ss:$0 sm:$0xff] }
 0x129   :  { %v144_v57 = vsel %vm143_vm7, %v320_v42, %v140_v55 }
 0x12a   :  { %v146_v58 = vmul.f32 %v144_v57, %v122_v56 }
 0x12c   :  { %v150_v59 = vmul.f32 %v311_v46, %v146_v58 }
 0x12e   :  { %v154_v60 = vadd.f32 %v312_v50, %v150_v59 }
 0x130   :  { %299 = vmatmul.msk.f32.vlgmr.msra.gmra.mxu3 %vm96_vm1, %v154_v60 }
 0x1a5   :  { %v184_v62 = vpop.f32.mrf.mxu1 }
 0x1a6   :  { %v185_v63 = vadd.f32 %v313_v61, %v184_v62 }
 0x1a8   :  { %v190_v0 = vmax.f32 %v185_v63, 0.0 }
 0x1aa   :  { %v192_v1 = vsel %vm96_vm1, %v190_v0, 0.0  ;;  %v198_v2 = vmul.f32 %v190_v0, %v190_v0 }
 0x1ab   :  { %193 = vadd.xlane.f32.xlu2 %v192_v1 }
 0x1ac   :  { %v200_v3 = vsel %vm96_vm1, %v198_v2, 0.0 }
 0x1b3   :  { %201 = vadd.xlane.f32.xlu2 %v200_v3  ;;  %v187_v4 = vpop.f32.mrf.mxu3 }
 0x1b4   :  { %v188_v5 = vadd.f32 %v313_v61, %v187_v4 }
 0x1b6   :  { %v191_v6 = vmax.f32 %v188_v5, 0.0 }
 0x1b8   :  { %v195_v7 = vsel %vm96_vm1, %v191_v6, 0.0  ;;  %v199_v8 = vmul.f32 %v191_v6, %v191_v6 }
 0x1b9   :  { %196 = vadd.xlane.f32.xlu0 %v195_v7 }
 0x1ba   :  { %v203_v9 = vsel %vm96_vm1, %v199_v8, 0.0 }
 0x1bb   :  { %204 = vadd.xlane.f32.xlu1 %v203_v9 }
 0x21e   :  { %v194_v10 = vpop.xlane.xlu2 %193 }
 0x21f   :  { %v206_v13 = vmul.f32 0.03125, %v194_v10 }
 0x221   :  { %v210_v17 = vmul.f32 %v206_v13, %v206_v13  ;;  %v216_v37 = vsub.f32 %v190_v0, %v206_v13 }
 0x226   :  { %v202_v15 = vpop.xlane.xlu2 %201 }
 0x227   :  { %v208_v18 = vmul.f32 0.03125, %v202_v15 }
 0x229   :  { %v212_v19 = vsub.f32 %v208_v18, %v210_v17 }
 0x22b   :  { %v214_v20 = vmax.f32 %v212_v19, 0.0 }
 0x22c   :  { %v197_v22 = vpop.xlane.xlu0 %196 }
 0x22d   :  { %v218_v21 = vadd.f32 1e-05, %v214_v20  ;;  %v207_v23 = vmul.f32 0.03125, %v197_v22 }
 0x22e   :  { %v205_v24 = vpop.xlane.xlu1 %204 }
 0x22f   :  { %321 = vrsqrt.f32 %v218_v21  ;;  %v211_v25 = vmul.f32 %v207_v23, %v207_v23  ;;  %v209_v26 = vmul.f32 0.03125, %v205_v24  ;;  %vm226_vm9 = vweird.f32 %v218_v21 }
 0x230   :  { %v217_v49 = vsub.f32 %v191_v6, %v207_v23 }
 0x231   :  { %v213_v27 = vsub.f32 %v209_v26, %v211_v25 }
 0x233   :  { %v215_v28 = vmax.f32 %v213_v27, 0.0 }
 0x235   :  { %v322_v29 = vpop.eup %321  ;;  %v219_v31 = vadd.f32 1e-05, %v215_v28 }
 0x236   :  { %v221_v30 = vmul.f32 %v322_v29, %v218_v21  ;;  %vm227_vm8 = vweird.f32 %v322_v29 }
 0x237   :  { %323 = vrsqrt.f32 %v219_v31  ;;  %vm228_vm10 = vmor %vm226_vm9, %vm227_vm8  ;;  %vm236_vm12 = vweird.f32 %v219_v31 }
 0x238   :  { %v222_v32 = vmul.f32 %v322_v29, %v221_v30 }
 0x23a   :  { %v223_v33 = vmul.f32 0.5, %v222_v32 }
 0x23c   :  { %v224_v34 = vsub.f32 1.5, %v223_v33 }
 0x23d   :  { %v324_v35 = vpop.eup %323 }
 0x23e   :  { %v225_v36 = vmul.f32 %v322_v29, %v224_v34  ;;  %v231_v38 = vmul.f32 %v324_v35, %v219_v31  ;;  %vm237_vm11 = vweird.f32 %v324_v35 }
 0x23f   :  { %vm238_vm13 = vmor %vm236_vm12, %vm237_vm11 }
 0x240   :  { %v229_v40 = vsel %vm228_vm10, %v322_v29, %v225_v36  ;;  %v232_v41 = vmul.f32 %v324_v35, %v231_v38 }
 0x241   :  { %v240_v42 = vmul.f32 %v229_v40, %v216_v37 }
 0x242   :  { %v233_v44 = vmul.f32 0.5, %v232_v41 }
 0x243   :  { %v244_v45 = vmul.f32 %v314_v39, %v240_v42 }
 0x244   :  { %v234_v46 = vsub.f32 1.5, %v233_v44 }
 0x245   :  { %v248_v47 = vadd.f32 %v315_v43, %v244_v45 }
 0x246   :  { %v235_v48 = vmul.f32 %v324_v35, %v234_v46 }
 0x247   :  { %300 = vmatmul.msk.f32.vlgmr.msra.gmra.mxu2 %vm96_vm1, %v248_v47 }
 0x248   :  { %v239_v50 = vsel %vm238_vm13, %v324_v35, %v235_v48 }
 0x249   :  { %v241_v51 = vmul.f32 %v239_v50, %v217_v49 }
 0x24b   :  { %v245_v52 = vmul.f32 %v314_v39, %v241_v51 }
 0x24d   :  { %v249_v53 = vadd.f32 %v315_v43, %v245_v52 }
 0x24f   :  { %301 = vmatmul.msk.f32.gmra.mxu2 %vm96_vm1, %v249_v53 }
 0x2ca   :  { %v281_v55 = vpop.f32.mrf.mxu2 }
 0x2cb   :  { %v282_v56 = vadd.f32 %v316_v54, %v281_v55 }
 0x2cd   :  { %288 = vst.msk [vmem:[%s503_s7] sm:$0xff] %vm287_vm14, %v282_v56 }
 0x2d2   :  { %v284_v57 = vpop.f32.mrf.mxu2 }
 0x2d3   :  { %v285_v58 = vadd.f32 %v316_v54, %v284_v57 }
 0x2d5   :  { %289 = vst.msk [vmem:[%s503_s7 + $0x8] sm:$0xff] %vm287_vm14, %v285_v58 }
 0x2d6   :  { %294 = vsyncpa [#allocation3], 1 }
 0x2d7   :  { %295 = vsyncpa [#allocation5], 1 }

</bundles_post_ra>
